<compile_context>
chip_gen: v7x
topology: tpu7x:2x2x1
jax: 0.10.0
libtpu: 0.0.40
codegen_flags: <defaults>
</compile_context>

<pallas_src>
import functools

import numpy as np
import jax
import jax.numpy as jnp
from jax.experimental import pallas as pl
from jax.experimental.pallas import tpu as pltpu


# ----------------------------------------------------------------------------
# Pallas kernel
# ----------------------------------------------------------------------------
def _mask_kernel(logits_ref, u_ref, com_ref, mask_ref, *maybe_soft,
                 temperature, threshold, emit_soft):
    # Gumbel(0,1) noise from a uniform sample (matches torch -log(-log(rand))).
    u = u_ref[...]
    gumbel = -jnp.log(-jnp.log(u))

    # z = (logits + gumbel) / T ; softmax over the hyperedge axis.  In the
    # (E, N) layout the reduction runs over SUBLANES (axis 0) and the node
    # axis sits on LANES, so the int8 mask stores stay lane-dense.
    logits = logits_ref[...].astype(jnp.float32)      # bf16 params upcast here
    z = (logits + gumbel) * (1.0 / temperature)
    z = z - jnp.max(z, axis=0, keepdims=True)
    e = jnp.exp(z)
    denom = jnp.sum(e, axis=0, keepdims=True)

    # Hard threshold without forming y_soft:  e/denom > t  <=>  e > t*denom.
    y_hard = e > (threshold * denom)
    com = com_ref[...]
    mask_ref[...] = jnp.where(y_hard, com, jnp.zeros_like(com))

    if emit_soft:
        # Debug path only; the forward pass never reads y_soft.
        maybe_soft[0][...] = e / denom


# ----------------------------------------------------------------------------
# Helpers
# ----------------------------------------------------------------------------
def _sample_uniform(key, shape):
    """Uniform(1e-6, 1) noise for the Gumbel transform (shared with tests)."""
    return jax.random.uniform(key, shape, dtype=jnp.float32,
                              minval=1e-6, maxval=1.0)


def _pick_tile_n(n, e_pad, logits_itemsize, emit_soft,
                 vmem_budget_bytes=20 * 1024 * 1024):
    """Node-axis (lane) tile size.

    Budget covers BOTH the double-buffered BlockSpec DMAs (logits + f32 noise
    + int8 incidence + int8 mask [+ f32 y_soft]) and ~4 simultaneously-live
    full-tile f32 temporaries inside the body, so the real footprint stays
    within v7x's 64 MiB physical VMEM.  For large N the tile is capped so the
    grid has >= 2 parallel steps (both v7x TensorCores fed)."""
    blk2 = 2 * e_pad * (logits_itemsize + 4 + 1 + 1 + (4 if emit_soft else 0))
    tmp = 4 * e_pad * 4
    per_col = max(blk2 + tmp, 1)
    budget_cols = max(vmem_budget_bytes // per_col, 128)
    budget_tile = max((budget_cols // 128) * 128, 128)

    if n <= 256:
        return n                       # single block covering all nodes
    # >= 2 grid steps, multiples of 128, never above the VMEM-budget tile.
    half_tile = max((((-(-n // 2)) + 127) // 128) * 128, 128)
    return max(128, min(budget_tile, half_tile))


# ----------------------------------------------------------------------------
# Kernel wrapper
# ----------------------------------------------------------------------------
def learnable_mask_matrix_kernel(logits_en, incidence_en, key, *,
                                 temperature=0.2, threshold=0.8,
                                 return_soft=False):
    """Gumbel-softmax masking hot path on TPU.

    Args:
      logits_en:    (E, N) float32/bfloat16 -- learnable parameter held
                    hyperedge-major (transpose of the torch (N, E) layout;
                    softmax runs over E = PyTorch dim=-1).
      incidence_en: (E, N) int-like -- binary hyperedge/node incidence.
      key:          jax PRNG key for the Gumbel noise.

    Returns:
      mask (E, N) int8                           if not return_soft
      (mask (E, N) int8, y_soft (E, N) float32)  if return_soft

    mask_prob of the torch module equals y_hard in the forward pass
    ((y_hard - y_soft).detach() + y_soft == y_hard numerically).
    TODO(synk): gradients would need a custom_vjp (straight-through);
    forward-only here.
    """
    E, N = logits_en.shape
    assert incidence_en.shape == (E, N)

    # Pad the hyperedge (sublane) axis to a multiple of 8 so f32 blocks and
    # sublane stores stay unmasked.  Padded logits rows are -1e30 -> their
    # exp underflows to 0 and they never pass the threshold.
    E_pad = -(-E // 8) * 8
    com = jnp.asarray(incidence_en).astype(jnp.int8)
    logits = jnp.asarray(logits_en)
    if E_pad != E:
        pad = ((0, E_pad - E), (0, 0))
        logits = jnp.pad(logits, pad, constant_values=-1e30)
        com = jnp.pad(com, pad)

    # Uniform noise generated directly in (E_pad, N): tile-size invariant.
    u = _sample_uniform(key, (E_pad, N))

    tn = _pick_tile_n(N, E_pad, jnp.dtype(logits.dtype).itemsize, return_soft)
    grid = (pl.cdiv(N, tn),)
    blk = pl.BlockSpec((E_pad, tn), lambda i: (0, i))

    mask_shape = jax.ShapeDtypeStruct((E_pad, N), jnp.int8)
    if return_soft:
        out_shape = (mask_shape, jax.ShapeDtypeStruct((E_pad, N), jnp.float32))
        out_specs = (blk, blk)
    else:
        out_shape = mask_shape
        out_specs = blk

    kernel = functools.partial(_mask_kernel,
                               temperature=float(temperature),
                               threshold=float(threshold),
                               emit_soft=return_soft)

    outs = pl.pallas_call(
        kernel,
        out_shape=out_shape,
        grid=grid,
        in_specs=[blk, blk, blk],
        out_specs=out_specs,
        compiler_params=pltpu.CompilerParams(
            dimension_semantics=("parallel",),
            vmem_limit_bytes=48 * 1024 * 1024),
    )(logits, u, com)

    if return_soft:
        mask, soft = outs
        if E_pad != E:
            mask, soft = mask[:E], soft[:E]
        return mask, soft
    mask = outs
    if E_pad != E:
        mask = mask[:E]
    return mask


# ----------------------------------------------------------------------------
# Python glue reproducing the dict / graph bookkeeping of the torch forward
# ----------------------------------------------------------------------------
def forward(DICT, num_nodes, num_hyperedges, coms_G, logits_en, key,
            temperature=0.2):
    # Build the incidence directly hyperedge-major (E, N) int8 on the host:
    # no device-side transpose anywhere on the hot path.
    com_en = np.zeros((num_hyperedges, num_nodes), dtype=np.int8)
    for hedge, values in DICT.items():
        for value in values:
            com_en[hedge, value] = 1

    # original_hyperedges_of_nodes
    original_hyperedges_of_nodes = {}
    for col, values in DICT.items():
        for node in values:
            original_hyperedges_of_nodes.setdefault(node, set()).add(col)

    # --- Pallas hot path: masked incidence, hyperedge-major (E, N) int8 ---
    mask_t = learnable_mask_matrix_kernel(
        logits_en, jnp.asarray(com_en), key, temperature=temperature)
    mask_np = np.asarray(jax.block_until_ready(mask_t))     # (E, N)

    # Masked incidence matrix -> dict (nonzero nodes per hyperedge).
    com_dict_mask_dict = {
        col: [int(v) for v in np.nonzero(mask_np[col])[0]]
        for col in range(num_hyperedges)
    }

    # Restore missing nodes to their original hyperedges.
    actual_all_nodes = set(range(num_nodes))
    nodes_in_new_hyperedges = (set.union(*map(set, com_dict_mask_dict.values()))
                               if com_dict_mask_dict else set())
    missing_nodes = actual_all_nodes - nodes_in_new_hyperedges
    for node in missing_nodes:
        for hyperedge in original_hyperedges_of_nodes.get(node, []):
            if hyperedge in com_dict_mask_dict:
                com_dict_mask_dict[hyperedge].append(int(node))

    # Community refinement: the original removes (current - updated) nodes from
    # a networkx Graph, i.e. keeps the intersection of node sets.
    # TODO(synk): networkx Graph edge bookkeeping is not reproduced; communities
    # are represented as plain node sets here.
    coms_G_refined = []
    for k in range(len(coms_G)):
        updated_nodes = set(com_dict_mask_dict[k])
        current_nodes = set(coms_G[k])
        coms_G_refined.append(current_nodes & updated_nodes)

    com_dict_refined = com_dict_mask_dict
    return com_dict_refined, coms_G_refined


# ----------------------------------------------------------------------------
# Main
# ----------------------------------------------------------------------------
if __name__ == "__main__":
    num_nodes = 16
    num_hyperedges = 8
    temperature = 0.2

    # Deterministic synthetic hypergraph: hyperedge k covers 3 nodes.
    DICT = {k: [(2 * k) % num_nodes, (2 * k + 1) % num_nodes,
                (2 * k + 2) % num_nodes] for k in range(num_hyperedges)}
    coms_G = [set(v) for v in DICT.values()]  # communities as node sets

    root = jax.random.PRNGKey(0)
    k_param, k_noise = jax.random.split(root)
    # Parameter held hyperedge-major (E, N) — transpose of the torch layout,
    # identical distribution at init (iid randn), and it removes a full device
    # transpose per forward call.
    logits_en = jax.random.normal(k_param, (num_hyperedges, num_nodes),
                                  dtype=jnp.float32)

    com_dict_refined, coms_G_refined = forward(
        DICT, num_nodes, num_hyperedges, coms_G, logits_en, k_noise,
        temperature=temperature)

    # --- Verification run (debug mode: also emit y_soft) ---
    incidence_en = np.zeros((num_hyperedges, num_nodes), dtype=np.int8)
    for k_, vs in DICT.items():
        for v in vs:
            incidence_en[k_, v] = 1
    mask_t, y_soft_t = learnable_mask_matrix_kernel(
        logits_en, jnp.asarray(incidence_en), k_noise,
        temperature=temperature, return_soft=True)
    jax.block_until_ready((mask_t, y_soft_t))

    mask_np = np.asarray(mask_t)       # (E, N)
    y_soft_np = np.asarray(y_soft_t)   # (E, N)

    # Reference computation (float64 numpy) using the same uniform draws.
    u_np = np.asarray(_sample_uniform(
        k_noise, (num_hyperedges, num_nodes))).astype(np.float64)
    g = -np.log(-np.log(u_np))
    z = (np.asarray(logits_en, dtype=np.float64) + g) / temperature
    z = z - z.max(axis=0, keepdims=True)
    e = np.exp(z)
    y_ref = e / e.sum(axis=0, keepdims=True)
    mask_ref = incidence_en * (y_ref > 0.8).astype(np.int8)

    # Softmax over the hyperedge axis sums to ~1 per node.
    assert np.allclose(y_soft_np.sum(axis=0), 1.0, atol=1e-3)
    # Kernel softmax matches the reference.
    assert np.allclose(y_soft_np, y_ref, atol=1e-3)
    # Mask is binary and only selects nodes present in the incidence.
    assert set(np.unique(mask_np).tolist()) <= {0, 1}
    assert np.all(mask_np <= incidence_en)
    # Exact agreement with the reference mask away from the 0.8 borderline.
    borderline = np.abs(y_ref - 0.8) < 1e-3
    assert np.all((mask_np == mask_ref) | borderline)

    assert isinstance(com_dict_refined, dict)
    assert len(coms_G_refined) == num_hyperedges

    print("KERNEL_OK")
</pallas_src>

<mosaic_0001>
module attributes {stable_mosaic.version = 11 : i64} {
  func.func @_mask_kernel(%arg0: i32, %arg1: memref<8x16xf32, #tpu.memory_space<vmem>>, %arg2: memref<8x16xf32, #tpu.memory_space<vmem>>, %arg3: memref<8x16xi8, #tpu.memory_space<vmem>>, %arg4: memref<8x16xi8, #tpu.memory_space<vmem>>) attributes {dimension_semantics = [#tpu.dimension_semantics<parallel>], iteration_bounds = array<i64: 1>, scalar_prefetch = 0 : i64, scratch_operands = 0 : i64, tpu.core_type = #tpu.core_type<tc>, window_params = [{transform_indices = @transform_0, window_bounds = array<i64: 8, 16>}, {transform_indices = @transform_1, window_bounds = array<i64: 8, 16>}, {transform_indices = @transform_2, window_bounds = array<i64: 8, 16>}, {transform_indices = @transform_3, window_bounds = array<i64: 8, 16>}]} {
    %c0 = arith.constant 0 : index
    %c0_0 = arith.constant 0 : index
    %0 = vector.load %arg2[%c0, %c0_0] : memref<8x16xf32, #tpu.memory_space<vmem>>, vector<8x16xf32>
    %1 = math.log %0 : vector<8x16xf32>
    %cst = arith.constant 0.000000e+00 : f32
    %2 = vector.broadcast %cst : f32 to vector<8x16xf32>
    %3 = arith.subf %2, %1 : vector<8x16xf32>
    %4 = math.log %3 : vector<8x16xf32>
    %cst_1 = arith.constant 0.000000e+00 : f32
    %5 = vector.broadcast %cst_1 : f32 to vector<8x16xf32>
    %6 = arith.subf %5, %4 : vector<8x16xf32>
    %c0_2 = arith.constant 0 : index
    %c0_3 = arith.constant 0 : index
    %7 = vector.load %arg1[%c0_2, %c0_3] : memref<8x16xf32, #tpu.memory_space<vmem>>, vector<8x16xf32>
    %8 = arith.addf %7, %6 : vector<8x16xf32>
    %cst_4 = arith.constant 5.000000e+00 : f32
    %9 = vector.broadcast %cst_4 : f32 to vector<8x16xf32>
    %10 = arith.mulf %8, %9 : vector<8x16xf32>
    %cst_5 = arith.constant dense<0xFF800000> : vector<16xf32>
    %11 = vector.multi_reduction <maximumf>, %10, %cst_5 [0] : vector<8x16xf32> to vector<16xf32>
    %12 = vector.shape_cast %11 : vector<16xf32> to vector<1x16xf32>
    %13 = vector.broadcast %12 : vector<1x16xf32> to vector<8x16xf32>
    %14 = arith.subf %10, %13 : vector<8x16xf32>
    %15 = math.exp %14 : vector<8x16xf32>
    %cst_6 = arith.constant dense<0.000000e+00> : vector<16xf32>
    %16 = vector.multi_reduction <add>, %15, %cst_6 [0] : vector<8x16xf32> to vector<16xf32>
    %17 = vector.shape_cast %16 : vector<16xf32> to vector<1x16xf32>
    %cst_7 = arith.constant 8.000000e-01 : f32
    %18 = vector.broadcast %cst_7 : f32 to vector<1x16xf32>
    %19 = arith.mulf %18, %17 : vector<1x16xf32>
    %20 = vector.broadcast %19 : vector<1x16xf32> to vector<8x16xf32>
    %21 = arith.cmpf ogt, %15, %20 : vector<8x16xf32>
    %c0_8 = arith.constant 0 : index
    %c0_9 = arith.constant 0 : index
    %22 = vector.load %arg3[%c0_8, %c0_9] : memref<8x16xi8, #tpu.memory_space<vmem>>, vector<8x16xi8>
    %c0_i8 = arith.constant 0 : i8
    %23 = vector.broadcast %c0_i8 : i8 to vector<8x16xi8>
    %24 = arith.select %21, %22, %23 : vector<8x16xi1>, vector<8x16xi8>
    %c0_10 = arith.constant 0 : index
    %c0_11 = arith.constant 0 : index
    %25 = vector.load %arg4[%c0_10, %c0_11] : memref<8x16xi8, #tpu.memory_space<vmem>>, vector<8x16xi8>
    tpu.vector_store %arg4[%c0_10, %c0_11], %24 {strides = array<i32>} : memref<8x16xi8, #tpu.memory_space<vmem>>, vector<8x16xi8>,
    return
  }
  func.func @transform_0(%arg0: i32) -> (i32, i32) {
    %c0_i32 = arith.constant 0 : i32
    %c0_i32_0 = arith.constant 0 : i32
    return %c0_i32, %arg0 : i32, i32
  }
  func.func @transform_1(%arg0: i32) -> (i32, i32) {
    %c0_i32 = arith.constant 0 : i32
    %c0_i32_0 = arith.constant 0 : i32
    return %c0_i32, %arg0 : i32, i32
  }
  func.func @transform_2(%arg0: i32) -> (i32, i32) {
    %c0_i32 = arith.constant 0 : i32
    %c0_i32_0 = arith.constant 0 : i32
    return %c0_i32, %arg0 : i32, i32
  }
  func.func @transform_3(%arg0: i32) -> (i32, i32) {
    %c0_i32 = arith.constant 0 : i32
    %c0_i32_0 = arith.constant 0 : i32
    return %c0_i32, %arg0 : i32, i32
  }
}

</mosaic_0001>

<bundles_post_ra>
// kernel: tpu_custom_call.1
= control target key start
LH: loop header
LB: loop body
LE: loop exit
PB: predicated region body
PF: predicated region fallthrough
CT: control target
= control target key end

     0   :  { %8 = vsyncpa [#allocation3], 0  ;;  %s235_s0 = inlined_call_operand.hbm [shape: f32[8,16], index: 0, kind: input, shape index: {}]   ;;  %s236_s1 = inlined_call_operand.hbm [shape: f32[8,16], index: 1, kind: input, shape index: {}]   ;;  %s237_s2 = inlined_call_operand.vmem [shape: s8[8,16], index: 2, kind: input, shape index: {}]   ;;  %s238_s3 = inlined_call_operand.hbm [shape: s8[8,16], index: 3, kind: output, shape index: {}]  }
   0x1   :  { %9 = vsyncpa [#allocation6], 0 }
   0x2   :  { %10 = vsyncpa [#allocation4], 0  ;;  %s173_s12 = smov [#allocation2]   ;;  %s174_s14 = smov [#allocation5]  }
   0x3   :  { %s17_s13 = sshll.u32 %s173_s12, 4  ;;  %s27_s15 = sshll.u32 %s174_s14, 4  ;;  %s18_s13 = int_to_ptr.vmem [resolvable:$true] %s17_s13  ;;  %s28_s15 = int_to_ptr.vmem [resolvable:$true] %s27_s15 }
   0x4   :  { %s101_s18 = scalar_lea.hbm %s235_s0, 128 }
   0x5   :  { %p102_p0 = scmp.ne.s32.totalorder %s235_s0, %s101_s18  ;;  %p105_p1 = scmp.lt.u32.totalorder %s101_s18, %s235_s0 }
   0x7   :  { %p107_p2 = pnand %p105_p1, %p102_p0 }
   0x9   :  { %110 = shalt.err (!%p107_p2)
}
   0xa   :  { %s111_s23 = scalar_lea.vmem %s18_s13, 128  ;;  %p116_p4 = scmp.lt.s32.totalorder %s18_s13, %s18_s13 }
   0xb   :  { %p112_p3 = scmp.ne.s32.totalorder %s18_s13, %s111_s23  ;;  %p117_p5 = scmp.lt.s32.totalorder %s111_s23, %s111_s23 }
   0xd   :  { %p118_p6 = por %p117_p5, %p116_p4 }
   0xf   :  { %p119_p7 = pnand %p118_p6, %p112_p3 }
  0x11   :  { %122 = shalt.err (!%p119_p7)
}
  0x12   :  { %20 = dma.hbm_to_vmem [thread:$0]  %s235_s0, 128, %s18_s13, [#allocation3]  }
  0x13   :  { %s123_s28 = scalar_lea.hbm %s236_s1, 128 }
  0x14   :  { %p124_p8 = scmp.ne.s32.totalorder %s236_s1, %s123_s28  ;;  %p127_p9 = scmp.lt.u32.totalorder %s123_s28, %s236_s1 }
  0x16   :  { %p129_p10 = pnand %p127_p9, %p124_p8 }
  0x18   :  { %132 = shalt.err (!%p129_p10)
}
  0x19   :  { %s133_s6 = scalar_lea.vmem %s28_s15, 128  ;;  %p138_p12 = scmp.lt.s32.totalorder %s28_s15, %s28_s15 }
  0x1a   :  { %p134_p11 = scmp.ne.s32.totalorder %s28_s15, %s133_s6  ;;  %p139_p13 = scmp.lt.s32.totalorder %s133_s6, %s133_s6 }
  0x1c   :  { %p140_p0 = por %p139_p13, %p138_p12 }
  0x1e   :  { %p141_p1 = pnand %p140_p0, %p134_p11 }
  0x20   :  { %144 = shalt.err (!%p141_p1)
}
  0x21   :  { %30 = dma.hbm_to_vmem [thread:$0]  %s236_s1, 128, %s28_s15, [#allocation6]  }
  0x22   :  { %167 = dma.done.wait [#allocation3], 128  }
  0x23   :  { %168 = vsyncadd [#allocation3], 4294967168 }
  0x24   :  { %169 = dma.done.wait [#allocation6], 128  }
  0x25   :  { %170 = vsyncadd [#allocation6], 4294967168  ;;  %v40_v0 = vld [vmem:[#allocation5] sm:$0xff]  ;;  %v47_v6 = vld [vmem:[#allocation2] sm:$0xff]  ;;  %vm50_vm0 = vcmask 130048   ;;  %s175_s1 = smov [#allocation7]  }
  0x26   :  { %95 = vlog2.f32 %v40_v0  ;;  %s82_s8 = sshll.u32 %s175_s1, 4  ;;  %v70_v28 = vld [vmem:[%s237_s2] sm:$0x3]  ;;  %vm74_vm3 = vcmask 123904   ;;  %s83_s8 = int_to_ptr.vmem [resolvable:$true] %s82_s8 }
  0x27   :  { %s145_s11 = scalar_lea.vmem %s83_s8, 32  ;;  %p150_p3 = scmp.lt.s32.totalorder %s83_s8, %s83_s8 }
  0x28   :  { %p146_p2 = scmp.ne.s32.totalorder %s83_s8, %s145_s11  ;;  %p151_p4 = scmp.lt.s32.totalorder %s145_s11, %s145_s11 }
  0x2a   :  { %p152_p5 = por %p151_p4, %p150_p3 }
  0x2c   :  { %p153_p6 = pnand %p152_p5, %p146_p2 }
  0x30   :  { %v96_v1 = vpop.eup %95 }
  0x31   :  { %v42_v2 = vmul.f32 0.6931472, %v96_v1 }
  0x33   :  { %v43_v3 = vsub.f32 0.0, %v42_v2 }
  0x35   :  { %97 = vlog2.f32 %v43_v3 }
  0x3f   :  { %v98_v4 = vpop.eup %97 }
  0x40   :  { %v45_v5 = vmul.f32 0.6931472, %v98_v4 }
  0x42   :  { %v46_v7 = vsub.f32 0.0, %v45_v5 }
  0x44   :  { %v48_v8 = vadd.f32 %v47_v6, %v46_v7 }
  0x46   :  { %v49_v9 = vmul.f32 5.0, %v48_v8 }
  0x48   :  { %v51_v10 = vsel %vm50_vm0, %v49_v9, -inf }
  0x49   :  { %v52_v11 = vrot.slane %v51_v10, 4 }
  0x4b   :  { %v53_v12 = vmax.f32 %v51_v10, %v52_v11 }
  0x4d   :  { %v54_v13 = vrot.slane %v53_v12, 2 }
  0x4f   :  { %v55_v14 = vmax.f32 %v53_v12, %v54_v13 }
  0x51   :  { %v56_v15 = vrot.slane %v55_v14, 1 }
  0x53   :  { %v57_v16 = vmax.f32 %v55_v14, %v56_v15 }
  0x55   :  { %v58_v17 = vsub.f32 %v49_v9, %v57_v16 }
  0x57   :  { %v59_v18 = vmul.f32 1.442695, %v58_v17 }
  0x59   :  { %99 = vpow2.f32 %v59_v18 }
  0x63   :  { %v100_v19 = vpop.eup %99 }
  0x64   :  { %v61_v20 = vsel %vm50_vm0, %v100_v19, 0.0 }
  0x65   :  { %v62_v21 = vrot.slane %v61_v20, 4 }
  0x67   :  { %v63_v22 = vadd.f32 %v62_v21, %v61_v20 }
  0x69   :  { %v64_v23 = vrot.slane %v63_v22, 2 }
  0x6b   :  { %v65_v24 = vadd.f32 %v64_v23, %v63_v22 }
  0x6d   :  { %v66_v25 = vrot.slane %v65_v24, 1 }
  0x6f   :  { %v67_v26 = vadd.f32 %v66_v25, %v65_v24 }
  0x71   :  { %v68_v27 = vmul.f32 0.8, %v67_v26 }
  0x73   :  { %vm69_vm1 = vcmp.gt.f32.partialorder %v100_v19, %v68_v27 }
  0x74   :  { %vm71_vm2 = vmpackc.low %vm69_vm1, %vm69_vm1 }
  0x75   :  { %vm72_vm4 = vmpackc.even %vm71_vm2, %vm71_vm2 }
  0x76   :  { %v73_v29 = vsel %vm72_vm4, %v70_v28, 0 }
  0x77   :  { %75 = vst.msk [vmem:[#allocation7] sm:$0x3] %vm74_vm3, %v73_v29 }
  0x78   :  { %156 = shalt.err (!%p153_p6)
}
  0x79   :  { %s157_s14 = scalar_lea.hbm %s238_s3, 32 }
  0x7a   :  { %p158_p7 = scmp.ne.s32.totalorder %s238_s3, %s157_s14  ;;  %p161_p8 = scmp.lt.u32.totalorder %s157_s14, %s238_s3 }
  0x7c   :  { %p163_p9 = pnand %p161_p8, %p158_p7 }
  0x7e   :  { %166 = shalt.err (!%p163_p9)
}
  0x7f   :  { %85 = dma.vmem_to_hbm [thread:$0]  %s83_s8, 32, %s238_s3, [#allocation4]  }
  0x80   :  { %171 = dma.done.wait [#allocation4], 32  }
  0x81   :  { %172 = vsyncadd [#allocation4], 4294967264 }
  0x82   :  { %89 = vsyncpa [#allocation3], 1 }
  0x83   :  { %90 = vsyncpa [#allocation6], 1 }
  0x84   :  { %91 = vsyncpa [#allocation4], 1 }

</bundles_post_ra>
